<compile_context>
chip_gen: v7x
topology: tpu7x:2x2x1
jax: 0.10.0
libtpu: 0.0.40
codegen_flags: <defaults>
</compile_context>

<pallas_src>
import functools

import jax
import jax.numpy as jnp
from jax.experimental import pallas as pl
from jax.experimental.pallas import tpu as pltpu


def gcn_kernel(adj_ref, xw_ref, b_ref, scale_ref, offset_ref,
               out_ref, acc_ref, *, tk):
    """One (row-tile i, k-tile k) grid step of the fused GCN forward.

    adj_ref : [tm, tk]            bf16   adjacency tile (streamed)
    xw_ref  : [tk, d_out] or      bf16   pre-transformed features (chunk or
              [n_cols_p, d_out]          fully VMEM-resident)
    acc_ref : [tm, d_out]         f32    aggregation accumulator (VMEM scratch)
    """
    k = pl.program_id(1)

    @pl.when(k == 0)
    def _():
        acc_ref[...] = jnp.zeros_like(acc_ref)

    # Select the K-chunk of XW: either the streamed block, or a slice of the
    # fully resident copy (shape check is static at trace time).
    if xw_ref.shape[0] == tk:
        xw = xw_ref[...]
    else:
        xw = xw_ref[pl.ds(pl.multiple_of(k * tk, tk), tk), :]

    # Aggregation: [tm, tk](bf16) @ [tk, d_out](bf16) -> f32 accumulate (MXU).
    acc_ref[...] += jnp.dot(adj_ref[...], xw,
                            preferred_element_type=jnp.float32)

    @pl.when(k == pl.num_programs(1) - 1)
    def _():
        # Bias + ReLU (the linear's W was folded into XW in the wrapper).
        h = jnp.maximum(acc_ref[...] + b_ref[...], 0.0)
        # f_norm: per-row mean / biased var, scale & offset (f32 epilogue,
        # executed once per output tile, not per reduction step).
        mean = jnp.mean(h, axis=1, keepdims=True)
        var = jnp.mean((h - mean) ** 2, axis=1, keepdims=True) + 1e-10
        out_ref[...] = ((h - mean) * scale_ref[...] * jax.lax.rsqrt(var)
                        + offset_ref[...]).astype(out_ref.dtype)


def gcn_forward(feat_in, adj_norm, params, *, tm=512, tk=512):
    """feat_in: [N, D_in] f32. adj_norm: [N, N] f32 (sym-normalized, dense)."""
    W = params["W"]            # [D_in, D_out]  (already transposed vs nn.Linear)
    b = params["b"]            # [D_out]
    scale = params["scale"]    # [D_out]
    offset = params["offset"]  # [D_out]

    n, _ = feat_in.shape
    d_out = W.shape[1]

    # Tile sizes: 512-class, capped by (rounded-up) N; tm multiple of 8
    # (sublane), tk multiple of 128 (lane).
    tm = min(tm, pl.cdiv(n, 8) * 8)
    tk = min(tk, pl.cdiv(n, 128) * 128)
    n_rows_p = pl.cdiv(n, tm) * tm
    n_cols_p = pl.cdiv(n, tk) * tk

    # bf16 cast of the adjacency; the K/row pad (if any) is fused into the same
    # pass instead of a separate padded-f32 copy.
    adj_bf16 = adj_norm.astype(jnp.bfloat16)
    if (n_rows_p, n_cols_p) != (n, n):
        adj_bf16 = jnp.zeros((n_rows_p, n_cols_p), jnp.bfloat16
                             ).at[:n, :n].set(adj_bf16)

    # Fold W into the features: XW = feat_in @ W (tiny matmul, done in f32),
    # then stream it as bf16.  Padded rows are exactly zero, so the padded adj
    # columns contribute exactly 0 to the accumulation.
    xw = jnp.dot(feat_in, W, preferred_element_type=jnp.float32
                 ).astype(jnp.bfloat16)
    if n_cols_p != n:
        xw = jnp.zeros((n_cols_p, d_out), jnp.bfloat16).at[:n, :].set(xw)

    # Keep XW fully VMEM-resident (single DMA, no per-row-tile re-fetch) when
    # small enough; otherwise stream K-chunks.
    xw_bytes = n_cols_p * d_out * 2
    xw_resident = xw_bytes <= 4 * 1024 * 1024
    if xw_resident:
        xw_spec = pl.BlockSpec((n_cols_p, d_out), lambda i, k: (0, 0))
    else:
        xw_spec = pl.BlockSpec((tk, d_out), lambda i, k: (k, 0))

    grid = (n_rows_p // tm, n_cols_p // tk)

    # VMEM budget (double-buffered inputs/outputs + scratch) with headroom,
    # kept under v7x's 64 MiB physical VMEM.
    vmem_bytes = (2 * tm * tk * 2                                   # adj tiles
                  + (xw_bytes if xw_resident else 2 * tk * d_out * 2)
                  + tm * d_out * 4                                  # acc scratch
                  + 2 * tm * d_out * 4                              # out tiles
                  + 4 * d_out * 4)                                  # b/scale/offset
    vmem_limit = int(min(max(32 * 1024 * 1024, vmem_bytes + (4 << 20)),
                         56 * 1024 * 1024))

    out = pl.pallas_call(
        functools.partial(gcn_kernel, tk=tk),
        out_shape=jax.ShapeDtypeStruct((n_rows_p, d_out), jnp.float32),
        grid_spec=pltpu.PrefetchScalarGridSpec(
            num_scalar_prefetch=0,
            grid=grid,
            in_specs=[
                pl.BlockSpec((tm, tk), lambda i, k: (i, k)),       # adj tile
                xw_spec,                                           # XW
                pl.BlockSpec((1, d_out), lambda i, k: (0, 0)),     # bias
                pl.BlockSpec((1, d_out), lambda i, k: (0, 0)),     # scale
                pl.BlockSpec((1, d_out), lambda i, k: (0, 0)),     # offset
            ],
            out_specs=pl.BlockSpec((tm, d_out), lambda i, k: (i, 0)),
            scratch_shapes=[pltpu.VMEM((tm, d_out), jnp.float32)],
        ),
        compiler_params=pltpu.CompilerParams(
            dimension_semantics=("parallel", "arbitrary"),
            vmem_limit_bytes=vmem_limit,
        ),
    )(adj_bf16, xw, b.reshape(1, d_out), scale.reshape(1, d_out),
      offset.reshape(1, d_out))
    return out[:n]


def gcn_reference(feat_in, adj_norm, params):
    """Pure-JAX f32 reference matching the PyTorch forward."""
    W, b, scale, offset = params["W"], params["b"], params["scale"], params["offset"]
    feat_aggr = adj_norm @ feat_in
    h = jnp.maximum(feat_aggr @ W + b, 0.0)
    mean = h.mean(axis=1, keepdims=True)
    var = ((h - mean) ** 2).mean(axis=1, keepdims=True) + 1e-10
    return (h - mean) * scale * jax.lax.rsqrt(var) + offset


if __name__ == "__main__":
    key = jax.random.PRNGKey(0)
    n_nodes, dim_in, dim_out = 256, 32, 128

    k_feat, k_adj, k_w, k_b = jax.random.split(key, 4)
    feat_in = jax.random.normal(k_feat, (n_nodes, dim_in), dtype=jnp.float32)

    # Deterministic symmetric adjacency with self-loops, GCN sym-normalization:
    # adj_norm = D^-1/2 (A + I) D^-1/2  (densified stand-in for the CSR input).
    a = (jax.random.uniform(k_adj, (n_nodes, n_nodes)) < 0.05).astype(jnp.float32)
    a = jnp.maximum(a, a.T)
    a = a.at[jnp.arange(n_nodes), jnp.arange(n_nodes)].set(1.0)
    d_inv_sqrt = jax.lax.rsqrt(a.sum(axis=1))
    adj_norm = a * d_inv_sqrt[:, None] * d_inv_sqrt[None, :]

    # Linear(dim_in -> dim_out) params (W stored as [dim_in, dim_out]); f_norm
    # scale/offset match the PyTorch init (ones / zeros).
    params = {
        "W": 0.1 * jax.random.normal(k_w, (dim_in, dim_out), dtype=jnp.float32),
        "b": 0.1 * jax.random.normal(k_b, (dim_out,), dtype=jnp.float32),
        "scale": jnp.ones((dim_out,), dtype=jnp.float32),
        "offset": jnp.zeros((dim_out,), dtype=jnp.float32),
    }

    out = gcn_forward(feat_in, adj_norm, params)
    out = jax.block_until_ready(out)

    ref = gcn_reference(feat_in, adj_norm, params)
    assert out.shape == (n_nodes, dim_out)
    # Tolerance widened vs the pure-f32 reference because adj/XW are streamed
    # in bf16 (accumulation and epilogue remain f32).
    assert jnp.allclose(out, ref, atol=5e-2, rtol=5e-2), "mismatch vs reference"
    print("KERNEL_OK")
</pallas_src>

<mosaic_0001>
module attributes {stable_mosaic.version = 11 : i64} {
  func.func @gcn_kernel(%arg0: i32, %arg1: i32, %arg2: memref<256x256xbf16, #tpu.memory_space<vmem>>, %arg3: memref<256x128xbf16, #tpu.memory_space<vmem>>, %arg4: memref<1x128xf32, #tpu.memory_space<vmem>>, %arg5: memref<1x128xf32, #tpu.memory_space<vmem>>, %arg6: memref<1x128xf32, #tpu.memory_space<vmem>>, %arg7: memref<256x128xf32, #tpu.memory_space<vmem>>, %arg8: memref<256x128xf32, #tpu.memory_space<vmem>>) attributes {dimension_semantics = [#tpu.dimension_semantics<parallel>, #tpu.dimension_semantics<arbitrary>], iteration_bounds = array<i64: 1, 1>, scalar_prefetch = 0 : i64, scratch_operands = 1 : i64, tpu.core_type = #tpu.core_type<tc>, window_params = [{transform_indices = @transform_0, window_bounds = array<i64: 256, 256>}, {pipeline_mode = #tpu.pipeline_mode<synchronous>, transform_indices = @transform_1, window_bounds = array<i64: 256, 128>}, {pipeline_mode = #tpu.pipeline_mode<synchronous>, transform_indices = @transform_2, window_bounds = array<i64: 1, 128>}, {pipeline_mode = #tpu.pipeline_mode<synchronous>, transform_indices = @transform_3, window_bounds = array<i64: 1, 128>}, {pipeline_mode = #tpu.pipeline_mode<synchronous>, transform_indices = @transform_4, window_bounds = array<i64: 1, 128>}, {transform_indices = @transform_5, window_bounds = array<i64: 256, 128>}]} {
    %c0_i32 = arith.constant 0 : i32
    %0 = arith.cmpi eq, %arg1, %c0_i32 : i32
    %1 = arith.extui %0 : i1 to i32
    %c0_i32_0 = arith.constant 0 : i32
    %2 = arith.cmpi ne, %1, %c0_i32_0 : i32
    scf.if %2 {
      %cst_10 = arith.constant 0.000000e+00 : f32
      %12 = vector.broadcast %cst_10 : f32 to vector<256x128xf32>
      %c0_11 = arith.constant 0 : index
      %c0_12 = arith.constant 0 : index
      %13 = vector.load %arg8[%c0_11, %c0_12] : memref<256x128xf32, #tpu.memory_space<vmem>>, vector<256x128xf32>
      tpu.vector_store %arg8[%c0_11, %c0_12], %12 {strides = array<i32>} : memref<256x128xf32, #tpu.memory_space<vmem>>, vector<256x128xf32>,
    } else {
    }
    %c0 = arith.constant 0 : index
    %c0_1 = arith.constant 0 : index
    %3 = vector.load %arg3[%c0, %c0_1] : memref<256x128xbf16, #tpu.memory_space<vmem>>, vector<256x128xbf16>
    %c0_2 = arith.constant 0 : index
    %c0_3 = arith.constant 0 : index
    %4 = vector.load %arg8[%c0_2, %c0_3] : memref<256x128xf32, #tpu.memory_space<vmem>>, vector<256x128xf32>
    %c0_4 = arith.constant 0 : index
    %c0_5 = arith.constant 0 : index
    %5 = vector.load %arg2[%c0_4, %c0_5] : memref<256x256xbf16, #tpu.memory_space<vmem>>, vector<256x256xbf16>
    %cst = arith.constant dense<0.000000e+00> : vector<256x128xf32>
    %6 = tpu.matmul %5, %3, %cst {dimension_numbers = #tpu.dot_dimension_numbers<[1], [0], [0], [1], [0, 0, 1, 1], [], []>} : vector<256x256xbf16>, vector<256x128xbf16>, vector<256x128xf32> -> vector<256x128xf32>
    %7 = arith.addf %4, %6 : vector<256x128xf32>
    %c0_6 = arith.constant 0 : index
    %c0_7 = arith.constant 0 : index
    %8 = vector.load %arg8[%c0_6, %c0_7] : memref<256x128xf32, #tpu.memory_space<vmem>>, vector<256x128xf32>
    tpu.vector_store %arg8[%c0_6, %c0_7], %7 {strides = array<i32>} : memref<256x128xf32, #tpu.memory_space<vmem>>, vector<256x128xf32>,
    %c0_i32_8 = arith.constant 0 : i32
    %9 = arith.cmpi eq, %arg1, %c0_i32_8 : i32
    %10 = arith.extui %9 : i1 to i32
    %c0_i32_9 = arith.constant 0 : i32
    %11 = arith.cmpi ne, %10, %c0_i32_9 : i32
    scf.if %11 {
      %c0_10 = arith.constant 0 : index
      %c0_11 = arith.constant 0 : index
      %12 = vector.load %arg8[%c0_10, %c0_11] : memref<256x128xf32, #tpu.memory_space<vmem>>, vector<256x128xf32>
      %c0_12 = arith.constant 0 : index
      %c0_13 = arith.constant 0 : index
      %13 = vector.load %arg4[%c0_12, %c0_13] : memref<1x128xf32, #tpu.memory_space<vmem>>, vector<1x128xf32>
      %14 = vector.broadcast %13 : vector<1x128xf32> to vector<256x128xf32>
      %15 = arith.addf %12, %14 : vector<256x128xf32>
      %cst_14 = arith.constant 0.000000e+00 : f32
      %16 = vector.broadcast %cst_14 : f32 to vector<256x128xf32>
      %17 = arith.maximumf %15, %16 : vector<256x128xf32>
      %cst_15 = arith.constant dense<0.000000e+00> : vector<256xf32>
      %18 = vector.multi_reduction <add>, %17, %cst_15 [1] : vector<256x128xf32> to vector<256xf32>
      %19 = vector.shape_cast %18 : vector<256xf32> to vector<256x1xf32>
      %cst_16 = arith.constant 1.280000e+02 : f32
      %20 = vector.broadcast %cst_16 : f32 to vector<256x1xf32>
      %21 = arith.divf %19, %20 : vector<256x1xf32>
      %22 = vector.broadcast %21 : vector<256x1xf32> to vector<256x128xf32>
      %23 = arith.subf %17, %22 : vector<256x128xf32>
      %24 = arith.mulf %23, %23 : vector<256x128xf32>
      %cst_17 = arith.constant dense<0.000000e+00> : vector<256xf32>
      %25 = vector.multi_reduction <add>, %24, %cst_17 [1] : vector<256x128xf32> to vector<256xf32>
      %26 = vector.shape_cast %25 : vector<256xf32> to vector<256x1xf32>
      %cst_18 = arith.constant 1.280000e+02 : f32
      %27 = vector.broadcast %cst_18 : f32 to vector<256x1xf32>
      %28 = arith.divf %26, %27 : vector<256x1xf32>
      %cst_19 = arith.constant 1.000000e-10 : f32
      %29 = vector.broadcast %cst_19 : f32 to vector<256x1xf32>
      %30 = arith.addf %28, %29 : vector<256x1xf32>
      %31 = vector.broadcast %21 : vector<256x1xf32> to vector<256x128xf32>
      %32 = arith.subf %17, %31 : vector<256x128xf32>
      %c0_20 = arith.constant 0 : index
      %c0_21 = arith.constant 0 : index
      %33 = vector.load %arg5[%c0_20, %c0_21] : memref<1x128xf32, #tpu.memory_space<vmem>>, vector<1x128xf32>
      %34 = vector.broadcast %33 : vector<1x128xf32> to vector<256x128xf32>
      %35 = arith.mulf %32, %34 : vector<256x128xf32>
      %36 = math.rsqrt %30 : vector<256x1xf32>
      %37 = vector.broadcast %36 : vector<256x1xf32> to vector<256x128xf32>
      %38 = arith.mulf %35, %37 : vector<256x128xf32>
      %c0_22 = arith.constant 0 : index
      %c0_23 = arith.constant 0 : index
      %39 = vector.load %arg6[%c0_22, %c0_23] : memref<1x128xf32, #tpu.memory_space<vmem>>, vector<1x128xf32>
      %40 = vector.broadcast %39 : vector<1x128xf32> to vector<256x128xf32>
      %41 = arith.addf %38, %40 : vector<256x128xf32>
      %c0_24 = arith.constant 0 : index
      %c0_25 = arith.constant 0 : index
      %42 = vector.load %arg7[%c0_24, %c0_25] : memref<256x128xf32, #tpu.memory_space<vmem>>, vector<256x128xf32>
      tpu.vector_store %arg7[%c0_24, %c0_25], %41 {strides = array<i32>} : memref<256x128xf32, #tpu.memory_space<vmem>>, vector<256x128xf32>,
    } else {
    }
    return
  }
  func.func @transform_0(%arg0: i32, %arg1: i32) -> (i32, i32) {
    %c0_i32 = arith.constant 0 : i32
    return %arg0, %arg1 : i32, i32
  }
  func.func @transform_1(%arg0: i32, %arg1: i32) -> (i32, i32) {
    %c0_i32 = arith.constant 0 : i32
    %c0_i32_0 = arith.constant 0 : i32
    %c0_i32_1 = arith.constant 0 : i32
    return %c0_i32, %c0_i32_0 : i32, i32
  }
  func.func @transform_2(%arg0: i32, %arg1: i32) -> (i32, i32) {
    %c0_i32 = arith.constant 0 : i32
    %c0_i32_0 = arith.constant 0 : i32
    %c0_i32_1 = arith.constant 0 : i32
    return %c0_i32, %c0_i32_0 : i32, i32
  }
  func.func @transform_3(%arg0: i32, %arg1: i32) -> (i32, i32) {
    %c0_i32 = arith.constant 0 : i32
    %c0_i32_0 = arith.constant 0 : i32
    %c0_i32_1 = arith.constant 0 : i32
    return %c0_i32, %c0_i32_0 : i32, i32
  }
  func.func @transform_4(%arg0: i32, %arg1: i32) -> (i32, i32) {
    %c0_i32 = arith.constant 0 : i32
    %c0_i32_0 = arith.constant 0 : i32
    %c0_i32_1 = arith.constant 0 : i32
    return %c0_i32, %c0_i32_0 : i32, i32
  }
  func.func @transform_5(%arg0: i32, %arg1: i32) -> (i32, i32) {
    %c0_i32 = arith.constant 0 : i32
    %c0_i32_0 = arith.constant 0 : i32
    return %arg0, %c0_i32 : i32, i32
  }
}

</mosaic_0001>

<bundles_post_ra>
// kernel: tpu_custom_call.1
= control target key start
LH: loop header
LB: loop body
LE: loop exit
PB: predicated region body
PF: predicated region fallthrough
CT: control target
= control target key end

     0   :  { %10 = vsyncpa [#allocation4], 0  ;;  %s2206_s0 = inlined_call_operand.hbm [shape: bf16[256,256], index: 0, kind: input, shape index: {}]   ;;  %s2207_s1 = inlined_call_operand.hbm [shape: bf16[256,128], index: 1, kind: input, shape index: {}]   ;;  %s2208_s2 = inlined_call_operand.vmem [shape: f32[1,128], index: 2, kind: input, shape index: {}]   ;;  %s2209_s3 = inlined_call_operand.vmem [shape: f32[1,128], index: 3, kind: input, shape index: {}]   ;;  %s2210_s4 = inlined_call_operand.vmem [shape: f32[1,128], index: 4, kind: input, shape index: {}]   ;;  %s2211_s5 = inlined_call_operand.hbm [shape: f32[256,128], index: 5, kind: output, shape index: {}]  }
   0x1   :  { %11 = vsyncpa [#allocation7], 0 }
   0x2   :  { %12 = vsyncpa [#allocation5], 0  ;;  %s1636_s18 = smov [#allocation3]   ;;  %s1564_s22 = scalar_lea.hbm %s2206_s0, 4096 }
   0x3   :  { %s18_s19 = sshll.u32 %s1636_s18, 4  ;;  %p1565_p0 = scmp.ne.s32.totalorder %s2206_s0, %s1564_s22  ;;  %s19_s19 = int_to_ptr.vmem [resolvable:$true] %s18_s19 }
   0x4   :  { %p1568_p1 = scmp.lt.u32.totalorder %s1564_s22, %s2206_s0 }
   0x6   :  { %p1570_p2 = pnand %p1568_p1, %p1565_p0 }
   0x8   :  { %1573 = shalt.err (!%p1570_p2)
}
   0x9   :  { %s1574_s27 = scalar_lea.vmem %s19_s19, 4096  ;;  %p1579_p4 = scmp.lt.s32.totalorder %s19_s19, %s19_s19 }
   0xa   :  { %p1575_p3 = scmp.ne.s32.totalorder %s19_s19, %s1574_s27  ;;  %p1580_p5 = scmp.lt.s32.totalorder %s1574_s27, %s1574_s27 }
   0xc   :  { %p1581_p6 = por %p1580_p5, %p1579_p4 }
   0xe   :  { %p1582_p7 = pnand %p1581_p6, %p1575_p3 }
  0x10   :  { %1585 = shalt.err (!%p1582_p7)
}
  0x11   :  { %s1637_s28 = smov 128   ;;  %s1638_s29 = smov 8  }
  0x12   :  { %24 = dma.hbm_to_vmem [thread:$0]  %s2206_s0, 4096, %s19_s19, [#allocation4], %s1637_s28, %s1637_s28, %s1638_s29  }
  0x13   :  { %s1639_s7 = smov [#allocation6]   ;;  %s1586_s11 = scalar_lea.hbm %s2207_s1, 2048 }
  0x14   :  { %s30_s8 = sshll.u32 %s1639_s7, 4  ;;  %p1587_p8 = scmp.ne.s32.totalorder %s2207_s1, %s1586_s11  ;;  %s31_s8 = int_to_ptr.vmem [resolvable:$true] %s30_s8 }
  0x15   :  { %p1590_p9 = scmp.lt.u32.totalorder %s1586_s11, %s2207_s1 }
  0x17   :  { %p1592_p10 = pnand %p1590_p9, %p1587_p8 }
  0x19   :  { %1595 = shalt.err (!%p1592_p10)
}
  0x1a   :  { %s1596_s16 = scalar_lea.vmem %s31_s8, 2048  ;;  %p1601_p12 = scmp.lt.s32.totalorder %s31_s8, %s31_s8 }
  0x1b   :  { %p1597_p11 = scmp.ne.s32.totalorder %s31_s8, %s1596_s16  ;;  %p1602_p13 = scmp.lt.s32.totalorder %s1596_s16, %s1596_s16 }
  0x1d   :  { %p1603_p0 = por %p1602_p13, %p1601_p12 }
  0x1f   :  { %p1604_p1 = pnand %p1603_p0, %p1597_p11 }
  0x21   :  { %1607 = shalt.err (!%p1604_p1)
}
  0x22   :  { %s1640_s0 = smov 64   ;;  %s1641_s17 = smov 4  }
  0x23   :  { %36 = dma.hbm_to_vmem [thread:$0]  %s2207_s1, 2048, %s31_s8, [#allocation7], %s1640_s0, %s1640_s0, %s1641_s17  }
  0x24   :  { %1630 = dma.done.wait [#allocation4], 4096  }
  0x25   :  { %1631 = vsyncadd [#allocation4], 4294963200 }
  0x26   :  { %1632 = dma.done.wait [#allocation7], 2048  }
  0x27   :  { %1633 = vsyncadd [#allocation7], 4294965248  ;;  %v1436_v0 = vld [vmem:[#allocation6 + $0x40] sm:$0xff]   ;;  %v1438_v2 = vld [vmem:[#allocation6 + $0x48] sm:$0xff]  }
  0x28   :  { %v1437_v1 = vld [vmem:[#allocation6] sm:$0xff]   ;;  %1301 = vmatprep.subr.bf16.mxu0 %v1436_v0  ;;  %1413 = vmatprep.subr.bf16.mxu1 %v1436_v0  ;;  %v1439_v3 = vld [vmem:[#allocation6 + $0x8] sm:$0xff]   ;;  %v1440_v4 = vld [vmem:[#allocation6 + $0x50] sm:$0xff]  }
  0x29   :  { %1302 = vmatpush3.bf16.msra.mxu0 %v1437_v1  ;;  %1421 = vmatpush3.bf16.msra.mxu1 %v1437_v1  ;;  %v1441_v5 = vld [vmem:[#allocation6 + $0x10] sm:$0xff]   ;;  %v1442_v6 = vld [vmem:[#allocation6 + $0x58] sm:$0xff]   ;;  %v1444_v8 = vld [vmem:[#allocation6 + $0x60] sm:$0xff]  }
  0x2a   :  { %1303 = vmatprep.subr.bf16.mxu0 %v1438_v2  ;;  %1414 = vmatprep.subr.bf16.mxu1 %v1438_v2  ;;  %v1443_v7 = vld [vmem:[#allocation6 + $0x18] sm:$0xff]   ;;  %v1445_v9 = vld [vmem:[#allocation6 + $0x20] sm:$0xff]   ;;  %v1446_v10 = vld [vmem:[#allocation6 + $0x68] sm:$0xff]  }
  0x2b   :  { %v1454_v11 = vld [vmem:[#allocation3 + $0x4] ss:$8 sps:$4 sm:$0xff]   ;;  %v1448_v14 = vld [vmem:[#allocation6 + $0x70] sm:$0xff]   ;;  %v1450_v16 = vld [vmem:[#allocation6 + $0x78] sm:$0xff]  }
  0x2c   :  { %v1457_v12 = vld [vmem:[#allocation3 + $0x84] ss:$8 sps:$4 sm:$0xff]   ;;  %470 = vmatprep.mubr.bf16.mxu0 %v1454_v11  ;;  %v1449_v15 = vld [vmem:[#allocation6 + $0x30] sm:$0xff]   ;;  %v1451_v17 = vld [vmem:[#allocation6 + $0x38] sm:$0xff]  }
  0x2d   :  { %1304 = vmatpush3.bf16.msra.mxu0 %v1439_v3  ;;  %1422 = vmatpush3.bf16.msra.mxu1 %v1439_v3  ;;  %v1447_v13 = vld [vmem:[#allocation6 + $0x28] sm:$0xff]   ;;  %v1458_v20 = vld [vmem:[#allocation3 + $0x14] ss:$8 sps:$4 sm:$0xff]   ;;  %v1460_v22 = vld [vmem:[#allocation3 + $0x10] ss:$8 sps:$4 sm:$0xff]  }
  0x2e   :  { %1305 = vmatprep.subr.bf16.mxu0 %v1440_v4  ;;  %1415 = vmatprep.subr.bf16.mxu1 %v1440_v4  ;;  %v1452_v18 = vld [vmem:[#allocation3] ss:$8 sps:$4 sm:$0xff]   ;;  %v1461_v21 = vld [vmem:[#allocation3 + $0x94] ss:$8 sps:$4 sm:$0xff]   ;;  %v1463_v23 = vld [vmem:[#allocation3 + $0x90] ss:$8 sps:$4 sm:$0xff]  }
  0x2f   :  { %534 = vmatprep.mubr.bf16.mxu1 %v1457_v12  ;;  %v1455_v19 = vld [vmem:[#allocation3 + $0x80] ss:$8 sps:$4 sm:$0xff]   ;;  %v1464_v24 = vld [vmem:[#allocation3 + $0x24] ss:$8 sps:$4 sm:$0xff]   ;;  %v1470_v28 = vld [vmem:[#allocation3 + $0x34] ss:$8 sps:$4 sm:$0xff]  }
  0x30   :  { %v1467_v25 = vld [vmem:[#allocation3 + $0xa4] ss:$8 sps:$4 sm:$0xff]   ;;  %v1466_v26 = vld [vmem:[#allocation3 + $0x20] ss:$8 sps:$4 sm:$0xff]   ;;  %v1473_v29 = vld [vmem:[#allocation3 + $0xb4] ss:$8 sps:$4 sm:$0xff]  }
  0x31   :  { %1306 = vmatpush3.bf16.msra.mxu0 %v1441_v5  ;;  %1423 = vmatpush3.bf16.msra.mxu1 %v1441_v5  ;;  %v1469_v27 = vld [vmem:[#allocation3 + $0xa0] ss:$8 sps:$4 sm:$0xff]   ;;  %v1472_v30 = vld [vmem:[#allocation3 + $0x30] ss:$8 sps:$4 sm:$0xff]   ;;  %v1476_v32 = vld [vmem:[#allocation3 + $0x44] ss:$8 sps:$4 sm:$0xff]  }
  0x32   :  { %1307 = vmatprep.subr.bf16.mxu0 %v1442_v6  ;;  %1416 = vmatprep.subr.bf16.mxu1 %v1442_v6  ;;  %v1475_v31 = vld [vmem:[#allocation3 + $0xb0] ss:$8 sps:$4 sm:$0xff]   ;;  %v1479_v33 = vld [vmem:[#allocation3 + $0xc4] ss:$8 sps:$4 sm:$0xff]   ;;  %v1478_v34 = vld [vmem:[#allocation3 + $0x40] ss:$8 sps:$4 sm:$0xff]  }
  0x33   :  { %v1481_v35 = vld [vmem:[#allocation3 + $0xc0] ss:$8 sps:$4 sm:$0xff]   ;;  %v1482_v36 = vld [vmem:[#allocation3 + $0x54] ss:$8 sps:$4 sm:$0xff]   ;;  %v1484_v38 = vld [vmem:[#allocation3 + $0x50] ss:$8 sps:$4 sm:$0xff]  }
  0x34   :  { %v1485_v37 = vld [vmem:[#allocation3 + $0xd4] ss:$8 sps:$4 sm:$0xff]   ;;  %v1487_v39 = vld [vmem:[#allocation3 + $0xd0] ss:$8 sps:$4 sm:$0xff]   ;;  %v1488_v40 = vld [vmem:[#allocation3 + $0x64] ss:$8 sps:$4 sm:$0xff]  }
  0x35   :  { %1308 = vmatpush3.bf16.msra.mxu0 %v1443_v7  ;;  %1424 = vmatpush3.bf16.msra.mxu1 %v1443_v7  ;;  %v1491_v41 = vld [vmem:[#allocation3 + $0xe4] ss:$8 sps:$4 sm:$0xff]   ;;  %v1490_v42 = vld [vmem:[#allocation3 + $0x60] ss:$8 sps:$4 sm:$0xff]   ;;  %v1494_v44 = vld [vmem:[#allocation3 + $0x74] ss:$8 sps:$4 sm:$0xff]  }
  0x36   :  { %1309 = vmatprep.subr.bf16.mxu0 %v1444_v8  ;;  %1417 = vmatprep.subr.bf16.mxu1 %v1444_v8  ;;  %v1493_v43 = vld [vmem:[#allocation3 + $0xe0] ss:$8 sps:$4 sm:$0xff]   ;;  %v1497_v45 = vld [vmem:[#allocation3 + $0xf4] ss:$8 sps:$4 sm:$0xff]   ;;  %v1496_v46 = vld [vmem:[#allocation3 + $0x70] ss:$8 sps:$4 sm:$0xff]  }
  0x37   :  { %v1499_v47 = vld [vmem:[#allocation3 + $0xf0] ss:$8 sps:$4 sm:$0xff]   ;;  %v1703_v52 = vld [vmem:[%s2208_s2] ss:$0 sm:$0xff] }
  0x39   :  { %1310 = vmatpush3.bf16.msra.mxu0 %v1445_v9  ;;  %1425 = vmatpush3.bf16.msra.mxu1 %v1445_v9 }
  0x3a   :  { %1311 = vmatprep.subr.bf16.mxu0 %v1446_v10  ;;  %1418 = vmatprep.subr.bf16.mxu1 %v1446_v10 }
  0x3d   :  { %1312 = vmatpush3.bf16.msra.mxu0 %v1447_v13  ;;  %1426 = vmatpush3.bf16.msra.mxu1 %v1447_v13 }
  0x3e   :  { %1313 = vmatprep.subr.bf16.mxu0 %v1448_v14  ;;  %1419 = vmatprep.subr.bf16.mxu1 %v1448_v14 }
  0x41   :  { %1314 = vmatpush3.bf16.msra.mxu0 %v1449_v15  ;;  %1427 = vmatpush3.bf16.msra.mxu1 %v1449_v15 }
  0x42   :  { %1315 = vmatprep.subr.bf16.mxu0 %v1450_v16  ;;  %1420 = vmatprep.subr.bf16.mxu1 %v1450_v16 }
  0x45   :  { %1316 = vmatpush3.bf16.msra.mxu0 %v1451_v17  ;;  %1428 = vmatpush3.bf16.msra.mxu1 %v1451_v17 }
  0x48   :  { %471 = vmatmul.mubr.bf16.vlgmr.msra.gmra.mrb[0].mxu0 %v1452_v18  ;;  %535 = vmatmul.mubr.bf16.vlgmr.msra.gmra.mrb[0].mxu1 %v1455_v19 }
  0x49   :  { %478 = vmatprep.mubr.bf16.mxu0 %v1458_v20  ;;  %542 = vmatprep.mubr.bf16.mxu1 %v1461_v21 }
  0x50   :  { %479 = vmatmul.mubr.bf16.gmra.mrb[4].mxu0 %v1460_v22  ;;  %543 = vmatmul.mubr.bf16.gmra.mrb[4].mxu1 %v1463_v23 }
  0x51   :  { %486 = vmatprep.mubr.bf16.mxu0 %v1464_v24  ;;  %550 = vmatprep.mubr.bf16.mxu1 %v1467_v25 }
  0x58   :  { %487 = vmatmul.mubr.bf16.gmra.mrb[8].mxu0 %v1466_v26  ;;  %551 = vmatmul.mubr.bf16.gmra.mrb[8].mxu1 %v1469_v27 }
  0x59   :  { %494 = vmatprep.mubr.bf16.mxu0 %v1470_v28  ;;  %558 = vmatprep.mubr.bf16.mxu1 %v1473_v29 }
  0x60   :  { %495 = vmatmul.mubr.bf16.gmra.mrb[12].mxu0 %v1472_v30  ;;  %559 = vmatmul.mubr.bf16.gmra.mrb[12].mxu1 %v1475_v31 }
  0x61   :  { %502 = vmatprep.mubr.bf16.mxu0 %v1476_v32  ;;  %566 = vmatprep.mubr.bf16.mxu1 %v1479_v33 }
  0x68   :  { %503 = vmatmul.mubr.bf16.gmra.mrb[16].mxu0 %v1478_v34  ;;  %567 = vmatmul.mubr.bf16.gmra.mrb[16].mxu1 %v1481_v35 }
  0x69   :  { %510 = vmatprep.mubr.bf16.mxu0 %v1482_v36  ;;  %574 = vmatprep.mubr.bf16.mxu1 %v1485_v37 }
  0x70   :  { %511 = vmatmul.mubr.bf16.gmra.mrb[20].mxu0 %v1484_v38  ;;  %575 = vmatmul.mubr.bf16.gmra.mrb[20].mxu1 %v1487_v39 }
  0x71   :  { %518 = vmatprep.mubr.bf16.mxu0 %v1488_v40  ;;  %582 = vmatprep.mubr.bf16.mxu1 %v1491_v41 }
  0x78   :  { %519 = vmatmul.mubr.bf16.gmra.mrb[24].mxu0 %v1490_v42  ;;  %583 = vmatmul.mubr.bf16.gmra.mrb[24].mxu1 %v1493_v43 }
  0x79   :  { %526 = vmatprep.mubr.bf16.mxu0 %v1494_v44  ;;  %590 = vmatprep.mubr.bf16.mxu1 %v1497_v45 }
  0x80   :  { %527 = vmatmul.mubr.bf16.gmra.mrb[28].mxu0 %v1496_v46  ;;  %591 = vmatmul.mubr.bf16.gmra.mrb[28].mxu1 %v1499_v47 }
 0x11b   :  { %v1317_v48 = vpop.f32.mrb[0].mxu0  ;;  %v1365_v49 = vpop.f32.mrb[0].mxu1 }
 0x11c   :  { %v1318_v50 = vpop.f32.mrb[1].mxu0  ;;  %v1366_v51 = vpop.f32.mrb[1].mxu1 }
 0x11d   :  { %v1319_v53 = vadd.f32 %v1318_v50, %v1317_v48  ;;  %v1367_v54 = vadd.f32 %v1366_v51, %v1365_v49  ;;  %v1320_v55 = vpop.f32.mrb[2].mxu0  ;;  %v1368_v56 = vpop.f32.mrb[2].mxu1 }
 0x11e   :  { %v1321_v57 = vpop.f32.mrb[3].mxu0  ;;  %v1369_v58 = vpop.f32.mrb[3].mxu1 }
 0x11f   :  { %v1322_v59 = vadd.f32 %v1321_v57, %v1320_v55  ;;  %v1370_v60 = vadd.f32 %v1369_v58, %v1368_v56  ;;  %v1706_v61 = vadd.f32 %v1319_v53, %v1703_v52  ;;  %v1709_v62 = vadd.f32 %v1367_v54, %v1703_v52 }
 0x121   :  { %v737_v63 = vmax.f32 %v1706_v61, 0.0  ;;  %v1713_v0 = vadd.f32 %v1370_v60, %v1703_v52  ;;  %v753_v4 = vmax.f32 %v1709_v62, 0.0  ;;  %v1722_v11 = vadd.f32 %v1322_v59, %v1703_v52 }
 0x123   :  { %v1323_v1 = vpop.f32.mrb[4].mxu0  ;;  %769 = vadd.xlane.f32.xlu0 %v737_v63  ;;  %v754_v2 = vmax.f32 %v1713_v0, 0.0  ;;  %v1371_v3 = vpop.f32.mrb[4].mxu1  ;;  %v738_v19 = vmax.f32 %v1722_v11, 0.0 }
 0x124   :  { %v1324_v5 = vpop.f32.mrb[5].mxu0  ;;  %v1372_v6 = vpop.f32.mrb[5].mxu1 }
 0x125   :  { %v1325_v7 = vadd.f32 %v1324_v5, %v1323_v1  ;;  %803 = vadd.xlane.f32.xlu1 %v754_v2  ;;  %v1326_v8 = vpop.f32.mrb[6].mxu0  ;;  %v1373_v9 = vadd.f32 %v1372_v6, %v1371_v3  ;;  %v1374_v10 = vpop.f32.mrb[6].mxu1 }
 0x126   :  { %v1327_v12 = vpop.f32.mrb[7].mxu0  ;;  %v1375_v13 = vpop.f32.mrb[7].mxu1 }
 0x127   :  { %v1328_v14 = vadd.f32 %v1327_v12, %v1326_v8  ;;  %801 = vadd.xlane.f32.xlu0 %v753_v4  ;;  %v1727_v15 = vadd.f32 %v1325_v7, %v1703_v52  ;;  %v1376_v16 = vadd.f32 %v1375_v13, %v1374_v10  ;;  %v1730_v17 = vadd.f32 %v1373_v9, %v1703_v52 }
 0x129   :  { %v739_v18 = vmax.f32 %v1727_v15, 0.0  ;;  %v1735_v20 = vadd.f32 %v1328_v14, %v1703_v52  ;;  %v755_v24 = vmax.f32 %v1730_v17, 0.0  ;;  %v1744_v25 = vadd.f32 %v1376_v16, %v1703_v52 }
 0x12b   :  { %v1329_v21 = vpop.f32.mrb[8].mxu0  ;;  %773 = vadd.xlane.f32.xlu1 %v739_v18  ;;  %771 = vadd.xlane.f32.xlu0 %v738_v19  ;;  %v1377_v22 = vpop.f32.mrb[8].mxu1  ;;  %v740_v23 = vmax.f32 %v1735_v20, 0.0  ;;  %v756_v35 = vmax.f32 %v1744_v25, 0.0 }
 0x12c   :  { %v1330_v26 = vpop.f32.mrb[9].mxu0  ;;  %v1378_v27 = vpop.f32.mrb[9].mxu1 }
 0x12d   :  { %v1331_v28 = vadd.f32 %v1330_v26, %v1329_v21  ;;  %v1332_v29 = vpop.f32.mrb[10].mxu0  ;;  %v1379_v30 = vadd.f32 %v1378_v27, %v1377_v22  ;;  %v1380_v31 = vpop.f32.mrb[10].mxu1 }
 0x12e   :  { %v1333_v32 = vpop.f32.mrb[11].mxu0  ;;  %v1381_v33 = vpop.f32.mrb[11].mxu1 }
 0x12f   :  { %775 = vadd.xlane.f32.xlu1 %v740_v23  ;;  %805 = vadd.xlane.f32.xlu0 %v755_v24  ;;  %v1334_v34 = vadd.f32 %v1333_v32, %v1332_v29  ;;  %v1752_v36 = vadd.f32 %v1331_v28, %v1703_v52  ;;  %v1382_v37 = vadd.f32 %v1381_v33, %v1380_v31 }
 0x130   :  { %v1755_v38 = vadd.f32 %v1379_v30, %v1703_v52 }
 0x131   :  { %v741_v39 = vmax.f32 %v1752_v36, 0.0  ;;  %v1759_v40 = vadd.f32 %v1334_v34, %v1703_v52  ;;  %v1768_v45 = vadd.f32 %v1382_v37, %v1703_v52 }
 0x132   :  { %v757_v44 = vmax.f32 %v1755_v38, 0.0 }
 0x133   :  { %v1335_v41 = vpop.f32.mrb[12].mxu0  ;;  %807 = vadd.xlane.f32.xlu1 %v756_v35  ;;  %777 = vadd.xlane.f32.xlu0 %v741_v39  ;;  %v1383_v42 = vpop.f32.mrb[12].mxu1  ;;  %v742_v43 = vmax.f32 %v1759_v40, 0.0  ;;  %v758_v56 = vmax.f32 %v1768_v45, 0.0 }
 0x134   :  { %v1336_v46 = vpop.f32.mrb[13].mxu0  ;;  %v1384_v47 = vpop.f32.mrb[13].mxu1 }
 0x135   :  { %v1337_v48 = vadd.f32 %v1336_v46, %v1335_v41  ;;  %v1338_v49 = vpop.f32.mrb[14].mxu0  ;;  %v1385_v50 = vadd.f32 %v1384_v47, %v1383_v42  ;;  %v1386_v51 = vpop.f32.mrb[14].mxu1 }
 0x136   :  { %v1339_v53 = vpop.f32.mrb[15].mxu0  ;;  %v1387_v54 = vpop.f32.mrb[15].mxu1 }
 0x137   :  { %779 = vadd.xlane.f32.xlu1 %v742_v43  ;;  %809 = vadd.xlane.f32.xlu0 %v757_v44  ;;  %v1340_v55 = vadd.f32 %v1339_v53, %v1338_v49  ;;  %v1776_v57 = vadd.f32 %v1337_v48, %v1703_v52  ;;  %v1388_v58 = vadd.f32 %v1387_v54, %v1386_v51 }
 0x138   :  { %v1779_v59 = vadd.f32 %v1385_v50, %v1703_v52 }
 0x139   :  { %v743_v60 = vmax.f32 %v1776_v57, 0.0  ;;  %v1783_v1 = vadd.f32 %v1340_v55, %v1703_v52  ;;  %v1792_v8 = vadd.f32 %v1388_v58, %v1703_v52 }
 0x13a   :  { %v759_v7 = vmax.f32 %v1779_v59, 0.0 }
 0x13b   :  { %v1341_v3 = vpop.f32.mrb[16].mxu0  ;;  %811 = vadd.xlane.f32.xlu1 %v758_v56  ;;  %781 = vadd.xlane.f32.xlu0 %v743_v60  ;;  %v1389_v5 = vpop.f32.mrb[16].mxu1  ;;  %v744_v6 = vmax.f32 %v1783_v1, 0.0  ;;  %v760_v27 = vmax.f32 %v1792_v8, 0.0 }
 0x13c   :  { %v1342_v9 = vpop.f32.mrb[17].mxu0  ;;  %v1390_v10 = vpop.f32.mrb[17].mxu1 }
 0x13d   :  { %v1343_v12 = vadd.f32 %v1342_v9, %v1341_v3  ;;  %v1344_v13 = vpop.f32.mrb[18].mxu0  ;;  %v1391_v14 = vadd.f32 %v1390_v10, %v1389_v5  ;;  %v1392_v16 = vpop.f32.mrb[18].mxu1 }
 0x13e   :  { %v1345_v21 = vpop.f32.mrb[19].mxu0  ;;  %v1393_v22 = vpop.f32.mrb[19].mxu1 }
 0x13f   :  { %783 = vadd.xlane.f32.xlu1 %v744_v6  ;;  %813 = vadd.xlane.f32.xlu0 %v759_v7  ;;  %v1346_v26 = vadd.f32 %v1345_v21, %v1344_v13  ;;  %v1800_v28 = vadd.f32 %v1343_v12, %v1703_v52  ;;  %v1394_v29 = vadd.f32 %v1393_v22, %v1392_v16 }
 0x140   :  { %v1803_v30 = vadd.f32 %v1391_v14, %v1703_v52 }
 0x141   :  { %v745_v31 = vmax.f32 %v1800_v28, 0.0  ;;  %v1807_v32 = vadd.f32 %v1346_v26, %v1703_v52  ;;  %v1816_v42 = vadd.f32 %v1394_v29, %v1703_v52 }
 0x142   :  { %v761_v41 = vmax.f32 %v1803_v30, 0.0 }
 0x143   :  { %v1347_v33 = vpop.f32.mrb[20].mxu0  ;;  %815 = vadd.xlane.f32.xlu1 %v760_v27  ;;  %785 = vadd.xlane.f32.xlu0 %v745_v31  ;;  %v1395_v34 = vpop.f32.mrb[20].mxu1  ;;  %v746_v37 = vmax.f32 %v1807_v32, 0.0  ;;  %v2214_v58 = vmax.f32 %v1816_v42, 0.0  ;;  %v2225_v32 = vmax.f32 %v1816_v42, 0.0 }
 0x144   :  { %v1348_v46 = vpop.f32.mrb[21].mxu0  ;;  %v1396_v47 = vpop.f32.mrb[21].mxu1 }
 0x145   :  { %v1349_v48 = vadd.f32 %v1348_v46, %v1347_v33  ;;  %v1350_v49 = vpop.f32.mrb[22].mxu0  ;;  %v1397_v50 = vadd.f32 %v1396_v47, %v1395_v34  ;;  %v1398_v51 = vpop.f32.mrb[22].mxu1 }
 0x146   :  { %v1351_v53 = vpop.f32.mrb[23].mxu0  ;;  %v1399_v54 = vpop.f32.mrb[23].mxu1 }
 0x147   :  { %787 = vadd.xlane.f32.xlu1 %v746_v37  ;;  %817 = vadd.xlane.f32.xlu0 %v761_v41  ;;  %v1352_v55 = vadd.f32 %v1351_v53, %v1350_v49  ;;  %v1824_v3 = vadd.f32 %v1349_v48, %v1703_v52  ;;  %v1400_v5 = vadd.f32 %v1399_v54, %v1398_v51 }
 0x148   :  { %v1827_v9 = vadd.f32 %v1397_v50, %v1703_v52 }
 0x149   :  { %v2217_v10 = vmax.f32 %v1824_v3, 0.0  ;;  %v1831_v12 = vadd.f32 %v1352_v55, %v1703_v52  ;;  %v1840_v22 = vadd.f32 %v1400_v5, %v1703_v52  ;;  %v2224_v30 = vmax.f32 %v1824_v3, 0.0 }
 0x14a   :  { %v2213_v21 = vmax.f32 %v1827_v9, 0.0  ;;  %v2226_v3 = vmax.f32 %v1827_v9, 0.0 }
 0x14b   :  { %v1353_v13 = vpop.f32.mrb[24].mxu0  ;;  %819 = vadd.xlane.f32.xlu1 %v2214_v58  ;;  %789 = vadd.xlane.f32.xlu0 %v2217_v10  ;;  %v1401_v14 = vpop.f32.mrb[24].mxu1  ;;  %v2212_v16 = vmax.f32 %v1831_v12, 0.0  ;;  %v2215_v51 = vmax.f32 %v1840_v22, 0.0  ;;  %v2227_v42 = vmax.f32 %v1831_v12, 0.0  ;;  %v2229_v12 = vmax.f32 %v1840_v22, 0.0 }
 0x14c   :  { %v1354_v26 = vpop.f32.mrb[25].mxu0  ;;  %v1402_v29 = vpop.f32.mrb[25].mxu1 }
 0x14d   :  { %v1355_v33 = vadd.f32 %v1354_v26, %v1353_v13  ;;  %v1356_v34 = vpop.f32.mrb[26].mxu0  ;;  %v1403_v46 = vadd.f32 %v1402_v29, %v1401_v14  ;;  %v1404_v47 = vpop.f32.mrb[26].mxu1 }
 0x14e   :  { %v1357_v48 = vpop.f32.mrb[27].mxu0  ;;  %v1405_v49 = vpop.f32.mrb[27].mxu1 }
 0x14f   :  { %791 = vadd.xlane.f32.xlu1 %v2212_v16  ;;  %821 = vadd.xlane.f32.xlu0 %v2213_v21  ;;  %v1358_v50 = vadd.f32 %v1357_v48, %v1356_v34  ;;  %v1848_v53 = vadd.f32 %v1355_v33, %v1703_v52  ;;  %v1406_v54 = vadd.f32 %v1405_v49, %v1404_v47 }
 0x150   :  { %v1851_v55 = vadd.f32 %v1403_v46, %v1703_v52 }
 0x151   :  { %v2216_v5 = vmax.f32 %v1848_v53, 0.0  ;;  %v1855_v13 = vadd.f32 %v1358_v50, %v1703_v52  ;;  %v1864_v34 = vadd.f32 %v1406_v54, %v1703_v52  ;;  %v2228_v9 = vmax.f32 %v1848_v53, 0.0 }
 0x152   :  { %v765_v33 = vmax.f32 %v1851_v55, 0.0 }
 0x153   :  { %v1359_v14 = vpop.f32.mrb[28].mxu0  ;;  %823 = vadd.xlane.f32.xlu1 %v2215_v51  ;;  %793 = vadd.xlane.f32.xlu0 %v2216_v5  ;;  %v1407_v26 = vpop.f32.mrb[28].mxu1  ;;  %v2223_v29 = vmax.f32 %v1855_v13, 0.0  ;;  %v2220_v5 = vmax.f32 %v1864_v34, 0.0  ;;  %v2230_v22 = vmax.f32 %v1855_v13, 0.0  ;;  %v2232_v13 = vmax.f32 %v1864_v34, 0.0 }
 0x154   :  { %v1360_v46 = vpop.f32.mrb[29].mxu0  ;;  %v1408_v47 = vpop.f32.mrb[29].mxu1 }
 0x155   :  { %v1361_v48 = vadd.f32 %v1360_v46, %v1359_v14  ;;  %v1362_v49 = vpop.f32.mrb[30].mxu0  ;;  %v1409_v50 = vadd.f32 %v1408_v47, %v1407_v26  ;;  %v1410_v16 = vpop.f32.mrb[30].mxu1 }
 0x156   :  { %v1363_v21 = vpop.f32.mrb[31].mxu0  ;;  %v1411_v58 = vpop.f32.mrb[31].mxu1 }
 0x157   :  { %795 = vadd.xlane.f32.xlu1 %v2223_v29  ;;  %825 = vadd.xlane.f32.xlu0 %v765_v33  ;;  %v1364_v51 = vadd.f32 %v1363_v21, %v1362_v49  ;;  %v1872_v54 = vadd.f32 %v1361_v48, %v1703_v52  ;;  %v1412_v10 = vadd.f32 %v1411_v58, %v1410_v16 }
 0x158   :  { %v1875_v14 = vadd.f32 %v1409_v50, %v1703_v52 }
 0x159   :  { %v2221_v26 = vmax.f32 %v1872_v54, 0.0  ;;  %v1879_v46 = vadd.f32 %v1364_v51, %v1703_v52  ;;  %v1882_v47 = vadd.f32 %v1412_v10, %v1703_v52  ;;  %v2231_v55 = vmax.f32 %v1872_v54, 0.0 }
 0x15a   :  { %v2219_v58 = vmax.f32 %v1875_v14, 0.0 }
 0x15b   :  { %827 = vadd.xlane.f32.xlu1 %v2220_v5  ;;  %797 = vadd.xlane.f32.xlu0 %v2221_v26  ;;  %v2218_v21 = vmax.f32 %v1879_v46, 0.0  ;;  %v2222_v16 = vmax.f32 %v1882_v47, 0.0  ;;  %v2233_v54 = vmax.f32 %v1879_v46, 0.0 }
 0x15f   :  { %799 = vadd.xlane.f32.xlu1 %v2218_v21  ;;  %829 = vadd.xlane.f32.xlu0 %v2219_v58 }
 0x163   :  { %831 = vadd.xlane.f32.xlu1 %v2222_v16 }
 0x1b0   :  { %v770_v52 = vpop.xlane.xlu0 %769 }
 0x1b1   :  { %v834_v10 = vmul.f32 0.0078125, %v770_v52 }
 0x1b2   :  { %v804_v48 = vpop.xlane.xlu1 %803 }
 0x1b3   :  { %v1899_v51 = vsub.f32 %v737_v63, %v834_v10  ;;  %v851_v63 = vmul.f32 0.0078125, %v804_v48 }
 0x1b4   :  { %v802_v49 = vpop.xlane.xlu0 %801 }
 0x1b5   :  { %v850_v50 = vmul.f32 0.0078125, %v802_v49  ;;  %v898_v21 = vmul.f32 %v1899_v51, %v1899_v51 }
 0x1b7   :  { %v1905_v58 = vsub.f32 %v753_v4, %v850_v50  ;;  %930 = vadd.xlane.f32.xlu0 %v898_v21 }
 0x1b8   :  { %v774_v5 = vpop.xlane.xlu1 %773  ;;  %v772_v26 = vpop.xlane.xlu0 %771 }
 0x1b9   :  { %v836_v16 = vmul.f32 0.0078125, %v774_v5  ;;  %v835_v29 = vmul.f32 0.0078125, %v772_v26  ;;  %v914_v61 = vmul.f32 %v1905_v58, %v1905_v58  ;;  %v1919_v5 = vsub.f32 %v754_v2, %v851_v63 }
 0x1bb   :  { %v1911_v52 = vsub.f32 %v739_v18, %v836_v16  ;;  %v1915_v10 = vsub.f32 %v738_v19, %v835_v29  ;;  %962 = vadd.xlane.f32.xlu0 %v914_v61  ;;  %v915_v16 = vmul.f32 %v1919_v5, %v1919_v5 }
 0x1bc   :  { %v776_v62 = vpop.xlane.xlu1 %775  ;;  %v806_v4 = vpop.xlane.xlu0 %805 }
 0x1bd   :  { %v852_v21 = vmul.f32 0.0078125, %v806_v4  ;;  %v837_v26 = vmul.f32 0.0078125, %v776_v62  ;;  %v900_v48 = vmul.f32 %v1911_v52, %v1911_v52  ;;  %v899_v15 = vmul.f32 %v1915_v10, %v1915_v10 }
 0x1bf   :  { %v1927_v11 = vsub.f32 %v755_v24, %v852_v21  ;;  %934 = vadd.xlane.f32.xlu0 %v900_v48  ;;  %932 = vadd.xlane.f32.xlu1 %v899_v15  ;;  %v1931_v0 = vsub.f32 %v740_v23, %v837_v26 }
 0x1c0   :  { %v808_v18 = vpop.xlane.xlu1 %807  ;;  %v778_v19 = vpop.xlane.xlu0 %777 }
 0x1c1   :  { %v838_v29 = vmul.f32 0.0078125, %v778_v19  ;;  %v853_v2 = vmul.f32 0.0078125, %v808_v18  ;;  %v916_v49 = vmul.f32 %v1927_v11, %v1927_v11  ;;  %v901_v63 = vmul.f32 %v1931_v0, %v1931_v0 }
 0x1c3   :  { %v1939_v17 = vsub.f32 %v741_v39, %v838_v29  ;;  %964 = vadd.xlane.f32.xlu1 %v915_v16  ;;  %966 = vadd.xlane.f32.xlu0 %v916_v49  ;;  %v1943_v20 = vsub.f32 %v756_v35, %v853_v2 }
 0x1c4   :  { %v780_v24 = vpop.xlane.xlu1 %779  ;;  %v810_v50 = vpop.xlane.xlu0 %809 }
 0x1c5   :  { %v854_v61 = vmul.f32 0.0078125, %v810_v50  ;;  %v839_v23 = vmul.f32 0.0078125, %v780_v24  ;;  %v902_v62 = vmul.f32 %v1939_v17, %v1939_v17  ;;  %v917_v26 = vmul.f32 %v1943_v20, %v1943_v20 }
 0x1c7   :  { %v1951_v36 = vsub.f32 %v757_v44, %v854_v61  ;;  %936 = vadd.xlane.f32.xlu1 %v901_v63  ;;  %938 = vadd.xlane.f32.xlu0 %v902_v62  ;;  %v1955_v25 = vsub.f32 %v742_v43, %v839_v23 }
 0x1c8   :  { %v812_v39 = vpop.xlane.xlu1 %811  ;;  %v782_v4 = vpop.xlane.xlu0 %781 }
 0x1c9   :  { %v840_v21 = vmul.f32 0.0078125, %v782_v4  ;;  %v855_v35 = vmul.f32 0.0078125, %v812_v39  ;;  %v918_v48 = vmul.f32 %v1951_v36, %v1951_v36  ;;  %v903_v19 = vmul.f32 %v1955_v25, %v1955_v25 }
 0x1cb   :  { %v1963_v38 = vsub.f32 %v743_v60, %v840_v21  ;;  %968 = vadd.xlane.f32.xlu1 %v917_v26  ;;  %970 = vadd.xlane.f32.xlu0 %v918_v48  ;;  %v1967_v40 = vsub.f32 %v758_v56, %v855_v35 }
 0x1cc   :  { %v784_v44 = vpop.xlane.xlu1 %783  ;;  %v814_v15 = vpop.xlane.xlu0 %813 }
 0x1cd   :  { %v856_v18 = vmul.f32 0.0078125, %v814_v15  ;;  %v841_v43 = vmul.f32 0.0078125, %v784_v44  ;;  %v904_v29 = vmul.f32 %v1963_v38, %v1963_v38  ;;  %v919_v49 = vmul.f32 %v1967_v40, %v1967_v40 }
 0x1cf   :  { %v1975_v57 = vsub.f32 %v759_v7, %v856_v18  ;;  %940 = vadd.xlane.f32.xlu1 %v903_v19  ;;  %942 = vadd.xlane.f32.xlu0 %v904_v29  ;;  %v1979_v45 = vsub.f32 %v744_v6, %v841_v43 }
 0x1d0   :  { %v816_v60 = vpop.xlane.xlu1 %815  ;;  %v786_v2 = vpop.xlane.xlu0 %785 }
 0x1d1   :  { %v842_v16 = vmul.f32 0.0078125, %v786_v2  ;;  %v857_v56 = vmul.f32 0.0078125, %v816_v60  ;;  %v920_v24 = vmul.f32 %v1975_v57, %v1975_v57  ;;  %v905_v23 = vmul.f32 %v1979_v45, %v1979_v45 }
 0x1d3   :  { %v1987_v59 = vsub.f32 %v745_v31, %v842_v16  ;;  %972 = vadd.xlane.f32.xlu1 %v919_v49  ;;  %974 = vadd.xlane.f32.xlu0 %v920_v24  ;;  %v1991_v1 = vsub.f32 %v760_v27, %v857_v56 }
 0x1d4   :  { %v788_v7 = vpop.xlane.xlu1 %787  ;;  %v818_v50 = vpop.xlane.xlu0 %817 }
 0x1d5   :  { %v858_v61 = vmul.f32 0.0078125, %v818_v50  ;;  %v843_v6 = vmul.f32 0.0078125, %v788_v7  ;;  %v906_v63 = vmul.f32 %v1987_v59, %v1987_v59  ;;  %v921_v4 = vmul.f32 %v1991_v1, %v1991_v1 }
 0x1d7   :  { %v1999_v28 = vsub.f32 %v761_v41, %v858_v61  ;;  %944 = vadd.xlane.f32.xlu1 %v905_v23  ;;  %946 = vadd.xlane.f32.xlu0 %v906_v63  ;;  %v2003_v8 = vsub.f32 %v746_v37, %v843_v6 }
 0x1d8   :  { %v820_v31 = vpop.xlane.xlu1 %819  ;;  %v790_v62 = vpop.xlane.xlu0 %789 }
 0x1d9   :  { %v844_v39 = vmul.f32 0.0078125, %v790_v62  ;;  %v859_v27 = vmul.f32 0.0078125, %v820_v31  ;;  %v922_v21 = vmul.f32 %v1999_v28, %v1999_v28  ;;  %v907_v15 = vmul.f32 %v2003_v8, %v2003_v8 }
 0x1db   :  { %v2011_v41 = vsub.f32 %v2224_v30, %v844_v39  ;;  %976 = vadd.xlane.f32.xlu1 %v921_v4  ;;  %978 = vadd.xlane.f32.xlu0 %v922_v21  ;;  %v2015_v37 = vsub.f32 %v2225_v32, %v859_v27 }
 0x1dc   :  { %v792_v35 = vpop.xlane.xlu1 %791  ;;  %v822_v26 = vpop.xlane.xlu0 %821 }
 0x1dd   :  { %v860_v48 = vmul.f32 0.0078125, %v822_v26  ;;  %v845_v44 = vmul.f32 0.0078125, %v792_v35  ;;  %v908_v18 = vmul.f32 %v2011_v41, %v2011_v41  ;;  %v923_v56 = vmul.f32 %v2015_v37, %v2015_v37 }
 0x1df   :  { %v2023_v43 = vsub.f32 %v2226_v3, %v860_v48  ;;  %948 = vadd.xlane.f32.xlu1 %v907_v15  ;;  %950 = vadd.xlane.f32.xlu0 %v908_v18  ;;  %v2027_v2 = vsub.f32 %v2227_v42, %v845_v44  ;;  %v2078_v42 = vld [vmem:[%s2209_s3] ss:$0 sm:$0xff] }
 0x1e0   :  { %v824_v19 = vpop.xlane.xlu1 %823  ;;  %v794_v29 = vpop.xlane.xlu0 %793 }
 0x1e1   :  { %v846_v60 = vmul.f32 0.0078125, %v794_v29  ;;  %v861_v16 = vmul.f32 0.0078125, %v824_v19  ;;  %v924_v49 = vmul.f32 %v2023_v43, %v2023_v43  ;;  %v909_v63 = vmul.f32 %v2027_v2, %v2027_v2 }
 0x1e2   :  { %v2234_v29 = vmax.f32 %v1875_v14, 0.0 }
 0x1e3   :  { %v2035_v24 = vsub.f32 %v2228_v9, %v846_v60  ;;  %980 = vadd.xlane.f32.xlu1 %v923_v56  ;;  %982 = vadd.xlane.f32.xlu0 %v924_v49  ;;  %v2039_v6 = vsub.f32 %v2229_v12, %v861_v16  ;;  %v2235_v49 = vmax.f32 %v1882_v47, 0.0 }
 0x1e4   :  { %v796_v7 = vpop.xlane.xlu1 %795  ;;  %v826_v50 = vpop.xlane.xlu0 %825 }
 0x1e5   :  { %v862_v61 = vmul.f32 0.0078125, %v826_v50  ;;  %v847_v23 = vmul.f32 0.0078125, %v796_v7  ;;  %v910_v31 = vmul.f32 %v2035_v24, %v2035_v24  ;;  %v925_v30 = vmul.f32 %v2039_v6, %v2039_v6 }
 0x1e7   :  { %v2047_v53 = vsub.f32 %v765_v33, %v862_v61  ;;  %952 = vadd.xlane.f32.xlu1 %v909_v63  ;;  %954 = vadd.xlane.f32.xlu0 %v910_v31  ;;  %v2051_v4 = vsub.f32 %v2230_v22, %v847_v23 }
 0x1e8   :  { %v828_v62 = vpop.xlane.xlu1 %827  ;;  %v798_v39 = vpop.xlane.xlu0 %797 }
 0x1e9   :  { %v848_v27 = vmul.f32 0.0078125, %v798_v39  ;;  %v863_v21 = vmul.f32 0.0078125, %v828_v62  ;;  %v926_v35 = vmul.f32 %v2047_v53, %v2047_v53  ;;  %v911_v18 = vmul.f32 %v2051_v4, %v2051_v4 }
 0x1eb   :  { %v2059_v33 = vsub.f32 %v2231_v55, %v848_v27  ;;  %984 = vadd.xlane.f32.xlu1 %v925_v30  ;;  %986 = vadd.xlane.f32.xlu0 %v926_v35  ;;  %v2063_v15 = vsub.f32 %v2232_v13, %v863_v21 }
 0x1ec   :  { %v800_v26 = vpop.xlane.xlu1 %799  ;;  %v830_v48 = vpop.xlane.xlu0 %829 }
 0x1ed   :  { %v849_v32 = vmul.f32 0.0078125, %v800_v26  ;;  %v864_v44 = vmul.f32 0.0078125, %v830_v48  ;;  %v912_v3 = vmul.f32 %v2059_v33, %v2059_v33  ;;  %v927_v14 = vmul.f32 %v2063_v15, %v2063_v15 }
 0x1ee   :  { %v1065_v48 = vmul.f32 %v2078_v42, %v1899_v51 }
 0x1ef   :  { %v881_v19 = vsub.f32 %v2233_v54, %v849_v32  ;;  %v2073_v60 = vsub.f32 %v2234_v29, %v864_v44  ;;  %956 = vadd.xlane.f32.xlu1 %v911_v18  ;;  %958 = vadd.xlane.f32.xlu0 %v912_v3  ;;  %v2097_v18 = vld [vmem:[%s2210_s4] ss:$0 sm:$0xff]  ;;  %v1081_v29 = vmul.f32 %v2078_v42, %v1905_v58  ;;  %s1642_s4 = smov [#allocation8]  }
 0x1f0   :  { %v832_v34 = vpop.xlane.xlu1 %831  ;;  %s1237_s23 = sshll.u32 %s1642_s4, 4  ;;  %s1238_s23 = int_to_ptr.vmem [resolvable:$true] %s1237_s23 }
 0x1f1   :  { %v2081_v16 = vmul.f32 %v2078_v42, %v881_v19  ;;  %v865_v56 = vmul.f32 0.0078125, %v832_v34  ;;  %v928_v46 = vmul.f32 %v2073_v60, %v2073_v60  ;;  %v913_v50 = vmul.f32 %v881_v19, %v881_v19  ;;  %s1608_s24 = scalar_lea.vmem %s1238_s23, 4096  ;;  %p1613_p3 = scmp.lt.s32.totalorder %s1238_s23, %s1238_s23 }
 0x1f2   :  { %p1609_p2 = scmp.ne.s32.totalorder %s1238_s23, %s1608_s24  ;;  %p1614_p4 = scmp.lt.s32.totalorder %s1608_s24, %s1608_s24 }
 0x1f3   :  { %v897_v9 = vsub.f32 %v2235_v49, %v865_v56  ;;  %988 = vadd.xlane.f32.xlu1 %v927_v14  ;;  %990 = vadd.xlane.f32.xlu0 %v928_v46 }
 0x1f4   :  { %p1615_p5 = por %p1614_p4, %p1613_p3 }
 0x1f5   :  { %v2090_v7 = vmul.f32 %v2078_v42, %v897_v9  ;;  %v929_v61 = vmul.f32 %v897_v9, %v897_v9 }
 0x1f6   :  { %p1616_p6 = pnand %p1615_p5, %p1609_p2 }
 0x1f7   :  { %960 = vadd.xlane.f32.xlu1 %v913_v50 }
 0x1fb   :  { %992 = vadd.xlane.f32.xlu1 %v929_v61 }
 0x244   :  { %v931_v12 = vpop.xlane.xlu0 %930 }
 0x245   :  { %v994_v23 = vmul.f32 0.0078125, %v931_v12 }
 0x247   :  { %v1026_v63 = vadd.f32 1e-10, %v994_v23 }
 0x248   :  { %v963_v31 = vpop.xlane.xlu0 %962 }
 0x249   :  { %1500 = vrsqrt.f32 %v1026_v63  ;;  %v1010_v62 = vmul.f32 0.0078125, %v963_v31 }
 0x24b   :  { %v1042_v39 = vadd.f32 1e-10, %v1010_v62  ;;  %v1066_v62 = vmul.f32 %v2078_v42, %v1915_v10 }
 0x24c   :  { %v933_v27 = vpop.xlane.xlu1 %932  ;;  %v935_v47 = vpop.xlane.xlu0 %934 }
 0x24d   :  { %1502 = vrsqrt.f32 %v1042_v39  ;;  %v995_v22 = vmul.f32 0.0078125, %v933_v27  ;;  %v996_v21 = vmul.f32 0.0078125, %v935_v47  ;;  %v1067_v27 = vmul.f32 %v2078_v42, %v1911_v52 }
 0x24e   :  { %v1083_v52 = vmul.f32 %v2078_v42, %v1927_v11 }
 0x24f   :  { %v1027_v30 = vadd.f32 1e-10, %v995_v22  ;;  %v1028_v35 = vadd.f32 1e-10, %v996_v21 }
 0x250   :  { %v965_v55 = vpop.xlane.xlu1 %964  ;;  %v967_v26 = vpop.xlane.xlu0 %966 }
 0x251   :  { %1504 = vrsqrt.f32 %v1027_v30  ;;  %v1011_v32 = vmul.f32 0.0078125, %v965_v55  ;;  %v1012_v44 = vmul.f32 0.0078125, %v967_v26 }
 0x252   :  { %1506 = vrsqrt.f32 %v1028_v35 }
 0x253   :  { %v1501_v13 = vpop.eup %1500  ;;  %v1043_v54 = vadd.f32 1e-10, %v1011_v32  ;;  %v1044_v19 = vadd.f32 1e-10, %v1012_v44  ;;  %v1082_v44 = vmul.f32 %v2078_v42, %v1919_v5 }
 0x254   :  { %v1129_v3 = vmul.f32 %v1501_v13, %v1065_v48  ;;  %v937_v34 = vpop.xlane.xlu1 %936  ;;  %v939_v56 = vpop.xlane.xlu0 %938 }
 0x255   :  { %1508 = vrsqrt.f32 %v1043_v54  ;;  %v997_v46 = vmul.f32 0.0078125, %v937_v34  ;;  %v998_v14 = vmul.f32 0.0078125, %v939_v56 }
 0x256   :  { %v1168_v51 = vadd.f32 %v2097_v18, %v1129_v3  ;;  %1510 = vrsqrt.f32 %v1044_v19 }
 0x257   :  { %v1503_v49 = vpop.eup %1502  ;;  %v1029_v50 = vadd.f32 1e-10, %v997_v46  ;;  %v1030_v61 = vadd.f32 1e-10, %v998_v14 }
 0x258   :  { %1200 = vst [vmem:[#allocation8] sm:$0xff] %v1168_v51  ;;  %v1145_v9 = vmul.f32 %v1503_v49, %v1081_v29  ;;  %v969_v12 = vpop.xlane.xlu1 %968  ;;  %v971_v23 = vpop.xlane.xlu0 %970  ;;  %v1068_v49 = vmul.f32 %v2078_v42, %v1931_v0 }
 0x259   :  { %1512 = vrsqrt.f32 %v1029_v50  ;;  %v1013_v31 = vmul.f32 0.0078125, %v969_v12  ;;  %v1014_v58 = vmul.f32 0.0078125, %v971_v23  ;;  %v1069_v50 = vmul.f32 %v2078_v42, %v1939_v17 }
 0x25a   :  { %v1184_v63 = vadd.f32 %v2097_v18, %v1145_v9  ;;  %1514 = vrsqrt.f32 %v1030_v61 }
 0x25b   :  { %v1505_v39 = vpop.eup %1504  ;;  %v1045_v47 = vadd.f32 1e-10, %v1013_v31  ;;  %v1046_v22 = vadd.f32 1e-10, %v1014_v58 }
 0x25c   :  { %1216 = vst [vmem:[#allocation8 + $0x80] sm:$0xff] %v1184_v63  ;;  %v1507_v21 = vpop.eup %1506  ;;  %v1130_v30 = vmul.f32 %v1505_v39, %v1066_v62  ;;  %v941_v35 = vpop.xlane.xlu1 %940 }
 0x25d   :  { %v943_v55 = vpop.xlane.xlu0 %942  ;;  %v1131_v26 = vmul.f32 %v1507_v21, %v1067_v27  ;;  %1516 = vrsqrt.f32 %v1045_v47  ;;  %v999_v48 = vmul.f32 0.0078125, %v941_v35  ;;  %v1084_v47 = vmul.f32 %v2078_v42, %v1943_v20 }
 0x25e   :  { %v1000_v32 = vmul.f32 0.0078125, %v943_v55  ;;  %v1169_v10 = vadd.f32 %v2097_v18, %v1130_v30  ;;  %1518 = vrsqrt.f32 %v1046_v22  ;;  %v1085_v21 = vmul.f32 %v2078_v42, %v1951_v36 }
 0x25f   :  { %v1509_v13 = vpop.eup %1508  ;;  %v1170_v3 = vadd.f32 %v2097_v18, %v1131_v26  ;;  %v1031_v54 = vadd.f32 1e-10, %v999_v48 }
 0x260   :  { %v1032_v19 = vadd.f32 1e-10, %v1000_v32  ;;  %v1511_v29 = vpop.eup %1510  ;;  %1201 = vst [vmem:[#allocation8 + $0x8] sm:$0xff] %v1169_v10  ;;  %v1146_v34 = vmul.f32 %v1509_v13, %v1082_v44  ;;  %v973_v56 = vpop.xlane.xlu1 %972 }
 0x261   :  { %v975_v51 = vpop.xlane.xlu0 %974  ;;  %1202 = vst [vmem:[#allocation8 + $0x10] sm:$0xff] %v1170_v3  ;;  %v1147_v46 = vmul.f32 %v1511_v29, %v1083_v52  ;;  %1520 = vrsqrt.f32 %v1031_v54  ;;  %v1015_v5 = vmul.f32 0.0078125, %v973_v56  ;;  %v1070_v52 = vmul.f32 %v2078_v42, %v1955_v25 }
 0x262   :  { %v1016_v14 = vmul.f32 0.0078125, %v975_v51  ;;  %v1185_v9 = vadd.f32 %v2097_v18, %v1146_v34  ;;  %1522 = vrsqrt.f32 %v1032_v19  ;;  %v1071_v54 = vmul.f32 %v2078_v42, %v1963_v38 }
 0x263   :  { %v1513_v11 = vpop.eup %1512  ;;  %v1186_v61 = vadd.f32 %v2097_v18, %v1147_v46  ;;  %v1047_v12 = vadd.f32 1e-10, %v1015_v5 }
 0x264   :  { %v1048_v23 = vadd.f32 1e-10, %v1016_v14  ;;  %v1515_v63 = vpop.eup %1514  ;;  %1217 = vst [vmem:[#allocation8 + $0x88] sm:$0xff] %v1185_v9  ;;  %v1132_v31 = vmul.f32 %v1513_v11, %v1068_v49  ;;  %v945_v58 = vpop.xlane.xlu1 %944  ;;  %v1086_v9 = vmul.f32 %v2078_v42, %v1967_v40 }
 0x265   :  { %v947_v62 = vpop.xlane.xlu0 %946  ;;  %1218 = vst [vmem:[#allocation8 + $0x90] sm:$0xff] %v1186_v61  ;;  %v1133_v39 = vmul.f32 %v1515_v63, %v1069_v50  ;;  %1524 = vrsqrt.f32 %v1047_v12  ;;  %v1001_v0 = vmul.f32 0.0078125, %v945_v58  ;;  %v1087_v50 = vmul.f32 %v2078_v42, %v1975_v57 }
 0x266   :  { %v1002_v27 = vmul.f32 0.0078125, %v947_v62  ;;  %v1171_v22 = vadd.f32 %v2097_v18, %v1132_v31  ;;  %1526 = vrsqrt.f32 %v1048_v23 }
 0x267   :  { %v1517_v17 = vpop.eup %1516  ;;  %v1172_v30 = vadd.f32 %v2097_v18, %v1133_v39  ;;  %v1033_v35 = vadd.f32 1e-10, %v1001_v0 }
 0x268   :  { %v1034_v55 = vadd.f32 1e-10, %v1002_v27  ;;  %v1519_v26 = vpop.eup %1518  ;;  %1203 = vst [vmem:[#allocation8 + $0x18] sm:$0xff] %v1171_v22  ;;  %v1148_v48 = vmul.f32 %v1517_v17, %v1084_v47  ;;  %v977_v32 = vpop.xlane.xlu1 %976  ;;  %v1072_v27 = vmul.f32 %v2078_v42, %v1979_v45  ;;  %v1073_v22 = vmul.f32 %v2078_v42, %v1987_v59 }
 0x269   :  { %v979_v44 = vpop.xlane.xlu0 %978  ;;  %1204 = vst [vmem:[#allocation8 + $0x20] sm:$0xff] %v1172_v30  ;;  %v1149_v10 = vmul.f32 %v1519_v26, %v1085_v21  ;;  %1528 = vrsqrt.f32 %v1033_v35  ;;  %v1017_v20 = vmul.f32 0.0078125, %v977_v32 }
 0x26a   :  { %v1018_v13 = vmul.f32 0.0078125, %v979_v44  ;;  %v1187_v3 = vadd.f32 %v2097_v18, %v1148_v48  ;;  %1530 = vrsqrt.f32 %v1034_v55 }
 0x26b   :  { %v1521_v36 = vpop.eup %1520  ;;  %v1188_v19 = vadd.f32 %v2097_v18, %v1149_v10  ;;  %v1049_v29 = vadd.f32 1e-10, %v1017_v20  ;;  %v1088_v10 = vmul.f32 %v2078_v42, %v1991_v1 }
 0x26c   :  { %v1050_v34 = vadd.f32 1e-10, %v1018_v13  ;;  %v1523_v56 = vpop.eup %1522  ;;  %1219 = vst [vmem:[#allocation8 + $0x98] sm:$0xff] %v1187_v3  ;;  %v1134_v51 = vmul.f32 %v1521_v36, %v1070_v52  ;;  %v949_v46 = vpop.xlane.xlu1 %948  ;;  %v1089_v13 = vmul.f32 %v2078_v42, %v1999_v28 }
 0x26d   :  { %v951_v5 = vpop.xlane.xlu0 %950  ;;  %1220 = vst [vmem:[#allocation8 + $0xa0] sm:$0xff] %v1188_v19  ;;  %v1135_v14 = vmul.f32 %v1523_v56, %v1071_v54  ;;  %1532 = vrsqrt.f32 %v1049_v29  ;;  %v1003_v25 = vmul.f32 0.0078125, %v949_v46  ;;  %v1074_v46 = vmul.f32 %v2078_v42, %v2003_v8 }
 0x26e   :  { %v1004_v49 = vmul.f32 0.0078125, %v951_v5  ;;  %v1173_v11 = vadd.f32 %v2097_v18, %v1134_v51  ;;  %1534 = vrsqrt.f32 %v1050_v34 }
 0x26f   :  { %v1525_v38 = vpop.eup %1524  ;;  %v1174_v61 = vadd.f32 %v2097_v18, %v1135_v14  ;;  %v1035_v12 = vadd.f32 1e-10, %v1003_v25  ;;  %v1075_v14 = vmul.f32 %v2078_v42, %v2011_v41 }
 0x270   :  { %v1036_v23 = vadd.f32 1e-10, %v1004_v49  ;;  %v1527_v63 = vpop.eup %1526  ;;  %1205 = vst [vmem:[#allocation8 + $0x28] sm:$0xff] %v1173_v11  ;;  %v1150_v31 = vmul.f32 %v1525_v38, %v1086_v9  ;;  %v981_v58 = vpop.xlane.xlu1 %980 }
 0x271   :  { %v983_v62 = vpop.xlane.xlu0 %982  ;;  %1206 = vst [vmem:[#allocation8 + $0x30] sm:$0xff] %v1174_v61  ;;  %v1151_v39 = vmul.f32 %v1527_v63, %v1087_v50  ;;  %1536 = vrsqrt.f32 %v1035_v12  ;;  %v1019_v40 = vmul.f32 0.0078125, %v981_v58  ;;  %v1090_v63 = vmul.f32 %v2078_v42, %v2015_v37 }
 0x272   :  { %v1020_v0 = vmul.f32 0.0078125, %v983_v62  ;;  %v1189_v47 = vadd.f32 %v2097_v18, %v1150_v31  ;;  %1538 = vrsqrt.f32 %v1036_v23  ;;  %v1091_v58 = vmul.f32 %v2078_v42, %v2023_v43 }
 0x273   :  { %v1529_v57 = vpop.eup %1528  ;;  %v1190_v17 = vadd.f32 %v2097_v18, %v1151_v39  ;;  %v1051_v21 = vadd.f32 1e-10, %v1019_v40 }
 0x274   :  { %v1052_v30 = vadd.f32 1e-10, %v1020_v0  ;;  %v1531_v35 = vpop.eup %1530  ;;  %1221 = vst [vmem:[#allocation8 + $0xa8] sm:$0xff] %v1189_v47  ;;  %v1136_v55 = vmul.f32 %v1529_v57, %v1072_v27  ;;  %v953_v26 = vpop.xlane.xlu1 %952 }
 0x275   :  { %v955_v48 = vpop.xlane.xlu0 %954  ;;  %1222 = vst [vmem:[#allocation8 + $0xb0] sm:$0xff] %v1190_v17  ;;  %v1137_v32 = vmul.f32 %v1531_v35, %v1073_v22  ;;  %1540 = vrsqrt.f32 %v1051_v21  ;;  %v1005_v45 = vmul.f32 0.0078125, %v953_v26  ;;  %v1076_v21 = vmul.f32 %v2078_v42, %v2027_v2 }
 0x276   :  { %v1006_v44 = vmul.f32 0.0078125, %v955_v48  ;;  %v1175_v20 = vadd.f32 %v2097_v18, %v1136_v55  ;;  %1542 = vrsqrt.f32 %v1052_v30  ;;  %v1077_v35 = vmul.f32 %v2078_v42, %v2035_v24 }
 0x277   :  { %v1533_v59 = vpop.eup %1532  ;;  %v1176_v52 = vadd.f32 %v2097_v18, %v1137_v32  ;;  %v1037_v3 = vadd.f32 1e-10, %v1005_v45  ;;  %v1092_v2 = vmul.f32 %v2078_v42, %v2039_v6  ;;  %v1093_v24 = vmul.f32 %v2078_v42, %v2047_v53 }
 0x278   :  { %v1038_v36 = vadd.f32 1e-10, %v1006_v44  ;;  %v1535_v54 = vpop.eup %1534  ;;  %1207 = vst [vmem:[#allocation8 + $0x38] sm:$0xff] %v1175_v20  ;;  %v1152_v19 = vmul.f32 %v1533_v59, %v1088_v10  ;;  %v985_v29 = vpop.xlane.xlu1 %984  ;;  %v1078_v6 = vmul.f32 %v2078_v42, %v2051_v4  ;;  %v1079_v53 = vmul.f32 %v2078_v42, %v2059_v33 }
 0x279   :  { %v987_v34 = vpop.xlane.xlu0 %986  ;;  %1208 = vst [vmem:[#allocation8 + $0x40] sm:$0xff] %v1176_v52  ;;  %v1153_v56 = vmul.f32 %v1535_v54, %v1089_v13  ;;  %1544 = vrsqrt.f32 %v1037_v3  ;;  %v1021_v1 = vmul.f32 0.0078125, %v985_v29 }
 0x27a   :  { %v1022_v51 = vmul.f32 0.0078125, %v987_v34  ;;  %v1191_v5 = vadd.f32 %v2097_v18, %v1152_v19  ;;  %1546 = vrsqrt.f32 %v1038_v36 }
 0x27b   :  { %v1537_v28 = vpop.eup %1536  ;;  %v1192_v25 = vadd.f32 %v2097_v18, %v1153_v56  ;;  %v1053_v49 = vadd.f32 1e-10, %v1021_v1 }
 0x27c   :  { %v1054_v9 = vadd.f32 1e-10, %v1022_v51  ;;  %v1539_v11 = vpop.eup %1538  ;;  %1223 = vst [vmem:[#allocation8 + $0xb8] sm:$0xff] %v1191_v5  ;;  %v1138_v38 = vmul.f32 %v1537_v28, %v1074_v46  ;;  %v957_v50 = vpop.xlane.xlu1 %956 }
 0x27d   :  { %v959_v61 = vpop.xlane.xlu0 %958  ;;  %1224 = vst [vmem:[#allocation8 + $0xc0] sm:$0xff] %v1192_v25  ;;  %v1139_v12 = vmul.f32 %v1539_v11, %v1075_v14  ;;  %1548 = vrsqrt.f32 %v1053_v49  ;;  %v1007_v8 = vmul.f32 0.0078125, %v957_v50  ;;  %v1094_v25 = vmul.f32 %v2078_v42, %v2063_v15 }
 0x27e   :  { %v1008_v23 = vmul.f32 0.0078125, %v959_v61  ;;  %v1177_v31 = vadd.f32 %v2097_v18, %v1138_v38  ;;  %1550 = vrsqrt.f32 %v1054_v9  ;;  %v1095_v9 = vmul.f32 %v2078_v42, %v2073_v60 }
 0x27f   :  { %v1541_v41 = vpop.eup %1540  ;;  %v1178_v62 = vadd.f32 %v2097_v18, %v1139_v12  ;;  %v1039_v39 = vadd.f32 1e-10, %v1007_v8 }
 0x280   :  { %v1040_v40 = vadd.f32 1e-10, %v1008_v23  ;;  %v1543_v0 = vpop.eup %1542  ;;  %1209 = vst [vmem:[#allocation8 + $0x48] sm:$0xff] %v1177_v31  ;;  %v1154_v27 = vmul.f32 %v1541_v41, %v1090_v63  ;;  %v989_v47 = vpop.xlane.xlu1 %988 }
 0x281   :  { %v991_v57 = vpop.xlane.xlu0 %990  ;;  %1210 = vst [vmem:[#allocation8 + $0x50] sm:$0xff] %v1178_v62  ;;  %v1155_v22 = vmul.f32 %v1543_v0, %v1091_v58  ;;  %1552 = vrsqrt.f32 %v1039_v39  ;;  %v1023_v37 = vmul.f32 0.0078125, %v989_v47 }
 0x282   :  { %v1024_v17 = vmul.f32 0.0078125, %v991_v57  ;;  %v1193_v30 = vadd.f32 %v2097_v18, %v1154_v27  ;;  %1554 = vrsqrt.f32 %v1040_v40 }
 0x283   :  { %v1545_v43 = vpop.eup %1544  ;;  %v1194_v55 = vadd.f32 %v2097_v18, %v1155_v22  ;;  %v1055_v26 = vadd.f32 1e-10, %v1023_v37 }
 0x284   :  { %v1056_v48 = vadd.f32 1e-10, %v1024_v17  ;;  %v1547_v32 = vpop.eup %1546  ;;  %1225 = vst [vmem:[#allocation8 + $0xc8] sm:$0xff] %v1193_v30  ;;  %v1140_v45 = vmul.f32 %v1545_v43, %v1076_v21  ;;  %v961_v44 = vpop.xlane.xlu1 %960 }
 0x285   :  { %1226 = vst [vmem:[#allocation8 + $0xd0] sm:$0xff] %v1194_v55  ;;  %v1141_v10 = vmul.f32 %v1547_v32, %v1077_v35  ;;  %1556 = vrsqrt.f32 %v1055_v26  ;;  %v1009_v20 = vmul.f32 0.0078125, %v961_v44 }
 0x286   :  { %v1179_v59 = vadd.f32 %v2097_v18, %v1140_v45  ;;  %1558 = vrsqrt.f32 %v1056_v48 }
 0x287   :  { %v1549_v13 = vpop.eup %1548  ;;  %v1180_v52 = vadd.f32 %v2097_v18, %v1141_v10  ;;  %v1041_v3 = vadd.f32 1e-10, %v1009_v20 }
 0x288   :  { %v1551_v36 = vpop.eup %1550  ;;  %1211 = vst [vmem:[#allocation8 + $0x58] sm:$0xff] %v1179_v59  ;;  %v1156_v54 = vmul.f32 %v1549_v13, %v1092_v2  ;;  %v993_v19 = vpop.xlane.xlu1 %992 }
 0x289   :  { %1212 = vst [vmem:[#allocation8 + $0x60] sm:$0xff] %v1180_v52  ;;  %v1157_v29 = vmul.f32 %v1551_v36, %v1093_v24  ;;  %1560 = vrsqrt.f32 %v1041_v3  ;;  %v1025_v34 = vmul.f32 0.0078125, %v993_v19 }
 0x28a   :  { %v1195_v56 = vadd.f32 %v2097_v18, %v1156_v54 }
 0x28b   :  { %v1553_v1 = vpop.eup %1552  ;;  %v1196_v51 = vadd.f32 %v2097_v18, %v1157_v29  ;;  %v1057_v46 = vadd.f32 1e-10, %v1025_v34 }
 0x28c   :  { %v1555_v5 = vpop.eup %1554  ;;  %1227 = vst [vmem:[#allocation8 + $0xd8] sm:$0xff] %v1195_v56  ;;  %v1142_v28 = vmul.f32 %v1553_v1, %v1078_v6 }
 0x28d   :  { %1228 = vst [vmem:[#allocation8 + $0xe0] sm:$0xff] %v1196_v51  ;;  %v1143_v14 = vmul.f32 %v1555_v5, %v1079_v53  ;;  %1562 = vrsqrt.f32 %v1057_v46 }
 0x28e   :  { %v1181_v4 = vadd.f32 %v2097_v18, %v1142_v28 }
 0x28f   :  { %v1557_v49 = vpop.eup %1556  ;;  %v1182_v33 = vadd.f32 %v2097_v18, %v1143_v14 }
 0x290   :  { %v1559_v11 = vpop.eup %1558  ;;  %1213 = vst [vmem:[#allocation8 + $0x68] sm:$0xff] %v1181_v4  ;;  %v1158_v38 = vmul.f32 %v1557_v49, %v1094_v25 }
 0x291   :  { %1214 = vst [vmem:[#allocation8 + $0x70] sm:$0xff] %v1182_v33  ;;  %v1159_v50 = vmul.f32 %v1559_v11, %v1095_v9 }
 0x292   :  { %v1197_v61 = vadd.f32 %v2097_v18, %v1158_v38 }
 0x293   :  { %v1561_v12 = vpop.eup %1560  ;;  %v1198_v8 = vadd.f32 %v2097_v18, %v1159_v50 }
 0x294   :  { %1229 = vst [vmem:[#allocation8 + $0xe8] sm:$0xff] %v1197_v61  ;;  %v1144_v15 = vmul.f32 %v1561_v12, %v2081_v16 }
 0x295   :  { %1230 = vst [vmem:[#allocation8 + $0xf0] sm:$0xff] %v1198_v8 }
 0x296   :  { %v1183_v23 = vadd.f32 %v2097_v18, %v1144_v15 }
 0x297   :  { %v1563_v63 = vpop.eup %1562 }
 0x298   :  { %1215 = vst [vmem:[#allocation8 + $0x78] sm:$0xff] %v1183_v23  ;;  %v1160_v60 = vmul.f32 %v1563_v63, %v2090_v7 }
 0x29a   :  { %v1199_v42 = vadd.f32 %v2097_v18, %v1160_v60 }
 0x29c   :  { %1231 = vst [vmem:[#allocation8 + $0xf8] sm:$0xff] %v1199_v42 }
 0x29d   :  { %1619 = shalt.err (!%p1616_p6)
}
 0x29e   :  { %s1620_s27 = scalar_lea.hbm %s2211_s5, 4096 }
 0x29f   :  { %p1621_p7 = scmp.ne.s32.totalorder %s2211_s5, %s1620_s27  ;;  %p1624_p8 = scmp.lt.u32.totalorder %s1620_s27, %s2211_s5 }
 0x2a1   :  { %p1626_p9 = pnand %p1624_p8, %p1621_p7 }
 0x2a3   :  { %1629 = shalt.err (!%p1626_p9)
}
 0x2a4   :  { %1243 = dma.vmem_to_hbm [thread:$0]  %s1238_s23, 4096, %s2211_s5, [#allocation5], %s1637_s28, %s1637_s28, %s1638_s29  }
 0x2a5   :  { %1634 = dma.done.wait [#allocation5], 4096  }
 0x2a6   :  { %1635 = vsyncadd [#allocation5], 4294963200 }
 0x2a7   :  { %1247 = vsyncpa [#allocation4], 1 }
 0x2a8   :  { %1248 = vsyncpa [#allocation7], 1 }
 0x2a9   :  { %1249 = vsyncpa [#allocation5], 1 }

</bundles_post_ra>
